<compile_context>
chip_gen: v7x
topology: tpu7x:2x2x1
jax: 0.10.0
libtpu: 0.0.40
codegen_flags: <defaults>
</compile_context>

<pallas_src>
import numpy as np
import jax
import jax.numpy as jnp
from jax import lax
from jax.experimental import pallas as pl
from jax.experimental.pallas import tpu as pltpu

WINDOW_SIZE = 11
SIGMA = 1.5
C1 = 0.01 ** 2
C2 = 0.03 ** 2


def _cdiv(a, b):
    return -(-a // b)


def _round_up(a, b):
    return _cdiv(a, b) * b


def _gaussian_1d(window_size, sigma):
    # Mirrors gaussian() in the PyTorch module (deterministic).
    g = np.array(
        [np.exp(-((x - window_size // 2) ** 2) / (2.0 * sigma ** 2))
         for x in range(window_size)],
        dtype=np.float64,
    )
    return (g / g.sum()).astype(np.float32)


_G1D = _gaussian_1d(WINDOW_SIZE, SIGMA)
_WINDOW = np.outer(_G1D, _G1D).astype(np.float32)  # (11, 11), for the reference


def _band_matrix(n, g):
    """A[i, j] = g[j - i + pad] inside the band, else 0.

    (A @ X) is the zero-padded 1-D Gaussian blur along axis 0 of X;
    (X @ A.T) the same along axis 1 (matches F.conv2d padding=window//2).
    """
    pad = len(g) // 2
    a = np.zeros((n, n), dtype=np.float32)
    for i in range(n):
        for j in range(max(0, i - pad), min(n, i + pad + 1)):
            a[i, j] = g[j - i + pad]
    return a


def _block_diag(block, reps):
    n = block.shape[0]
    out = np.zeros((n * reps, n * reps), dtype=block.dtype)
    for r in range(reps):
        out[r * n:(r + 1) * n, r * n:(r + 1) * n] = block
    return out


def _vmem_capacity_bytes():
    try:
        return int(pltpu.get_tpu_info().vmem_capacity_bytes)
    except Exception:
        return 64 * 1024 * 1024  # conservative fallback (v7x per-TensorCore)


def _estimate_vmem(tb, H, W):
    """Rough per-step VMEM footprint (lane-padding aware)."""
    L = tb * W
    Lp = _round_up(L, 128)
    inputs = 2 * 2 * H * Lp * 4                               # x1,x2 double-buffered
    bands = 2 * (5 * H * _round_up(5 * H, 128) + Lp * Lp) * 4  # band mats (2 bufs)
    temps = (2 * 5 * H + 10 * H) * Lp * 4                      # S, blurred, algebra
    return inputs + bands + temps + 2 * 128 * 4


def _pick_tb(B, H, W, budget_bytes):
    tb = max(1, min(_cdiv(128, W), B))      # lane-pack toward >= 128 lanes
    if B >= 2:
        tb = min(tb, _cdiv(B, 2))           # keep >= 2 grid steps (v7x: 2 TCs)
    while tb > 1 and _estimate_vmem(tb, H, W) > budget_bytes:
        tb -= 1
    return tb


def _make_kernel(H, W, tb, B):
    """Kernel closure over static shape parameters."""

    def kernel(x1_ref, x2_ref, bdh_ref, bdw_ref, out_ref):
        # x1_ref / x2_ref : (1, H, tb*W) lane-packed tiles in VMEM
        # bdh_ref         : (5H, 5H) block-diag vertical band matrix
        # bdw_ref         : (tb*W, tb*W) block-diag horizontal band matrix (A_w^T)
        # out_ref         : (1, 1, 128) per-tile partial SSIM sum (broadcast)
        x1 = x1_ref[0]                                        # (H, L)
        x2 = x2_ref[0]

        # All five blur operands for all tb images, stacked on the sublane axis.
        s = jnp.concatenate([x1, x2, x1 * x1, x2 * x2, x1 * x2], axis=0)  # (5H, L)

        # Separable 11x11 Gaussian blur (zero padded) as two batched MXU matmuls.
        y = jnp.dot(s, bdw_ref[...], preferred_element_type=jnp.float32)   # horizontal
        y = jnp.dot(bdh_ref[...], y, preferred_element_type=jnp.float32)   # vertical

        mu1 = y[0 * H:1 * H]
        mu2 = y[1 * H:2 * H]
        e11 = y[2 * H:3 * H]
        e22 = y[3 * H:4 * H]
        e12 = y[4 * H:5 * H]

        mu1_sq = mu1 * mu1
        mu2_sq = mu2 * mu2
        mu1_mu2 = mu1 * mu2
        sigma1_sq = e11 - mu1_sq
        sigma2_sq = e22 - mu2_sq
        sigma12 = e12 - mu1_mu2

        num = (2.0 * mu1_mu2 + C1) * (2.0 * sigma12 + C2)
        den = (mu1_sq + mu2_sq + C1) * (sigma1_sq + sigma2_sq + C2)

        r = pl.reciprocal(den, approx=True)   # EUP slot
        r = r * (2.0 - den * r)               # one Newton step: kills ~2^-12 bias
        ssim_map = num * r                    # (H, L), lane-dense

        # Mask lane columns belonging to zero-padded tail images (last tile only).
        valid_cols = jnp.minimum(tb, B - pl.program_id(0) * tb) * W
        lane = lax.broadcasted_iota(jnp.int32, ssim_map.shape, 1)
        tile_sum = jnp.sum(jnp.where(lane < valid_cols, ssim_map, 0.0))

        out_ref[...] = jnp.full(out_ref.shape, tile_sum, dtype=jnp.float32)

    return kernel


def ssim_loss(img1, img2, window_size=WINDOW_SIZE, size_average=True):
    """Pallas SSIM: img1/img2 are NCHW float arrays; returns scalar f32."""
    assert size_average, "only size_average=True (the module default) is implemented"
    # TODO(synk): size_average=False (per-sample mean over C,H,W) not implemented.
    N, C, H, W = img1.shape
    B = N * C
    x1 = img1.reshape(B, H, W).astype(jnp.float32)
    x2 = img2.reshape(B, H, W).astype(jnp.float32)

    cap = _vmem_capacity_bytes()
    tb = _pick_tb(B, H, W, budget_bytes=int(0.6 * cap))
    n_tiles = _cdiv(B, tb)
    L = tb * W

    # Pad the folded batch so every tile holds exactly tb images; padded images
    # are all-zero and masked out inside the kernel.
    B_pad = n_tiles * tb
    if B_pad != B:
        x1 = jnp.pad(x1, ((0, B_pad - B), (0, 0), (0, 0)))
        x2 = jnp.pad(x2, ((0, B_pad - B), (0, 0), (0, 0)))

    # Lane-pack: each grid step sees tb images side by side on the lane axis.
    def pack(x):
        return x.reshape(n_tiles, tb, H, W).transpose(0, 2, 1, 3).reshape(n_tiles, H, L)

    x1p = pack(x1)
    x2p = pack(x2)

    g = _gaussian_1d(window_size, SIGMA)
    bdh = jnp.asarray(_block_diag(_band_matrix(H, g), 5))      # (5H, 5H)
    bdw = jnp.asarray(_block_diag(_band_matrix(W, g).T, tb))   # (L, L)

    kernel = _make_kernel(H, W, tb, B)

    partials = pl.pallas_call(
        kernel,
        out_shape=jax.ShapeDtypeStruct((n_tiles, 1, 128), jnp.float32),
        grid_spec=pltpu.PrefetchScalarGridSpec(
            num_scalar_prefetch=0,
            grid=(n_tiles,),
            in_specs=[
                pl.BlockSpec((1, H, L), lambda i: (i, 0, 0)),
                pl.BlockSpec((1, H, L), lambda i: (i, 0, 0)),
                pl.BlockSpec((5 * H, 5 * H), lambda i: (0, 0)),
                pl.BlockSpec((L, L), lambda i: (0, 0)),
            ],
            out_specs=pl.BlockSpec((1, 1, 128), lambda i: (i, 0, 0)),
        ),
        compiler_params=pltpu.CompilerParams(
            dimension_semantics=("parallel",),
            vmem_limit_bytes=min(int(0.85 * cap), 128 * 1024 * 1024),
        ),
    )(x1p, x2p, bdh, bdw)

    total = jnp.float32(B * H * W)
    return jnp.sum(partials[:, 0, 0]) / total


def _ssim_ref(img1, img2, window_size=WINDOW_SIZE):
    """Pure-JAX reference mirroring F.conv2d(..., padding=5, groups=channel)."""
    N, C, H, W = img1.shape
    w = jnp.asarray(_WINDOW, dtype=jnp.float32)[None, None]        # (1,1,11,11)
    w = jnp.tile(w, (C, 1, 1, 1))                                   # (C,1,11,11)
    p = window_size // 2

    def conv(x):
        return lax.conv_general_dilated(
            x.astype(jnp.float32), w, (1, 1), [(p, p), (p, p)],
            feature_group_count=C,
            dimension_numbers=("NCHW", "OIHW", "NCHW"),
        )

    i1 = img1.astype(jnp.float32)
    i2 = img2.astype(jnp.float32)
    mu1, mu2 = conv(i1), conv(i2)
    mu1_sq, mu2_sq, mu1_mu2 = mu1 * mu1, mu2 * mu2, mu1 * mu2
    s1 = conv(i1 * i1) - mu1_sq
    s2 = conv(i2 * i2) - mu2_sq
    s12 = conv(i1 * i2) - mu1_mu2
    ssim_map = ((2 * mu1_mu2 + C1) * (2 * s12 + C2)) / \
               ((mu1_sq + mu2_sq + C1) * (s1 + s2 + C2))
    return jnp.mean(ssim_map)


if __name__ == "__main__":
    key = jax.random.PRNGKey(0)
    k1, k2 = jax.random.split(key)
    N, C, H, W = 2, 4, 16, 16
    img1 = jax.random.uniform(k1, (N, C, H, W), dtype=jnp.float32)
    img2 = jax.random.uniform(k2, (N, C, H, W), dtype=jnp.float32)

    out = jax.block_until_ready(ssim_loss(img1, img2))
    ref = jax.block_until_ready(_ssim_ref(img1, img2))

    assert out.shape == (), f"expected scalar, got {out.shape}"
    assert jnp.abs(out - ref) < 1e-3, f"mismatch: pallas={out} ref={ref}"
    print("KERNEL_OK")
</pallas_src>

<mosaic_0001>
module attributes {stable_mosaic.version = 11 : i64} {
  func.func @kernel(%arg0: i32, %arg1: memref<1x16x64xf32, #tpu.memory_space<vmem>>, %arg2: memref<1x16x64xf32, #tpu.memory_space<vmem>>, %arg3: memref<80x80xf32, #tpu.memory_space<vmem>>, %arg4: memref<64x64xf32, #tpu.memory_space<vmem>>, %arg5: memref<1x1x128xf32, #tpu.memory_space<vmem>>) attributes {dimension_semantics = [#tpu.dimension_semantics<parallel>], iteration_bounds = array<i64: 2>, scalar_prefetch = 0 : i64, scratch_operands = 0 : i64, tpu.core_type = #tpu.core_type<tc>, window_params = [{transform_indices = @transform_0, window_bounds = array<i64: 1, 16, 64>}, {transform_indices = @transform_1, window_bounds = array<i64: 1, 16, 64>}, {pipeline_mode = #tpu.pipeline_mode<synchronous>, transform_indices = @transform_2, window_bounds = array<i64: 80, 80>}, {pipeline_mode = #tpu.pipeline_mode<synchronous>, transform_indices = @transform_3, window_bounds = array<i64: 64, 64>}, {transform_indices = @transform_4, window_bounds = array<i64: 1, 1, 128>}]} {
    %c0 = arith.constant 0 : index
    %c0_0 = arith.constant 0 : index
    %c0_1 = arith.constant 0 : index
    %0 = vector.load %arg1[%c0, %c0_0, %c0_1] : memref<1x16x64xf32, #tpu.memory_space<vmem>>, vector<1x16x64xf32>
    %1 = vector.shape_cast %0 : vector<1x16x64xf32> to vector<16x64xf32>
    %c0_2 = arith.constant 0 : index
    %c0_3 = arith.constant 0 : index
    %c0_4 = arith.constant 0 : index
    %2 = vector.load %arg2[%c0_2, %c0_3, %c0_4] : memref<1x16x64xf32, #tpu.memory_space<vmem>>, vector<1x16x64xf32>
    %3 = vector.shape_cast %2 : vector<1x16x64xf32> to vector<16x64xf32>
    %4 = arith.mulf %1, %1 : vector<16x64xf32>
    %5 = arith.mulf %3, %3 : vector<16x64xf32>
    %6 = arith.mulf %1, %3 : vector<16x64xf32>
    %7 = tpu.concatenate %1, %3, %4, %5, %6 in 0 : vector<16x64xf32>, vector<16x64xf32>, vector<16x64xf32>, vector<16x64xf32>, vector<16x64xf32> -> vector<80x64xf32>
    %c0_5 = arith.constant 0 : index
    %c0_6 = arith.constant 0 : index
    %8 = vector.load %arg4[%c0_5, %c0_6] : memref<64x64xf32, #tpu.memory_space<vmem>>, vector<64x64xf32>
    %cst = arith.constant dense<0.000000e+00> : vector<80x64xf32>
    %9 = tpu.matmul %7, %8, %cst {dimension_numbers = #tpu.dot_dimension_numbers<[1], [0], [0], [1], [0, 0, 1, 1], [], []>} : vector<80x64xf32>, vector<64x64xf32>, vector<80x64xf32> -> vector<80x64xf32>
    %c0_7 = arith.constant 0 : index
    %c0_8 = arith.constant 0 : index
    %10 = vector.load %arg3[%c0_7, %c0_8] : memref<80x80xf32, #tpu.memory_space<vmem>>, vector<80x80xf32>
    %cst_9 = arith.constant dense<0.000000e+00> : vector<80x64xf32>
    %11 = tpu.matmul %10, %9, %cst_9 {dimension_numbers = #tpu.dot_dimension_numbers<[1], [0], [0], [1], [0, 0, 1, 1], [], []>} : vector<80x80xf32>, vector<80x64xf32>, vector<80x64xf32> -> vector<80x64xf32>
    %12 = vector.extract_strided_slice %11 {offsets = [0, 0], sizes = [16, 64], strides = [1, 1]} : vector<80x64xf32> to vector<16x64xf32>
    %13 = vector.extract_strided_slice %11 {offsets = [16, 0], sizes = [16, 64], strides = [1, 1]} : vector<80x64xf32> to vector<16x64xf32>
    %14 = vector.extract_strided_slice %11 {offsets = [32, 0], sizes = [16, 64], strides = [1, 1]} : vector<80x64xf32> to vector<16x64xf32>
    %15 = vector.extract_strided_slice %11 {offsets = [48, 0], sizes = [16, 64], strides = [1, 1]} : vector<80x64xf32> to vector<16x64xf32>
    %16 = vector.extract_strided_slice %11 {offsets = [64, 0], sizes = [16, 64], strides = [1, 1]} : vector<80x64xf32> to vector<16x64xf32>
    %17 = arith.mulf %12, %12 : vector<16x64xf32>
    %18 = arith.mulf %13, %13 : vector<16x64xf32>
    %19 = arith.mulf %12, %13 : vector<16x64xf32>
    %20 = arith.subf %14, %17 : vector<16x64xf32>
    %21 = arith.subf %15, %18 : vector<16x64xf32>
    %22 = arith.subf %16, %19 : vector<16x64xf32>
    %cst_10 = arith.constant 2.000000e+00 : f32
    %23 = vector.broadcast %cst_10 : f32 to vector<16x64xf32>
    %24 = arith.mulf %23, %19 : vector<16x64xf32>
    %cst_11 = arith.constant 9.99999974E-5 : f32
    %25 = vector.broadcast %cst_11 : f32 to vector<16x64xf32>
    %26 = arith.addf %24, %25 : vector<16x64xf32>
    %cst_12 = arith.constant 2.000000e+00 : f32
    %27 = vector.broadcast %cst_12 : f32 to vector<16x64xf32>
    %28 = arith.mulf %27, %22 : vector<16x64xf32>
    %cst_13 = arith.constant 8.99999984E-4 : f32
    %29 = vector.broadcast %cst_13 : f32 to vector<16x64xf32>
    %30 = arith.addf %28, %29 : vector<16x64xf32>
    %31 = arith.mulf %26, %30 : vector<16x64xf32>
    %32 = arith.addf %17, %18 : vector<16x64xf32>
    %cst_14 = arith.constant 9.99999974E-5 : f32
    %33 = vector.broadcast %cst_14 : f32 to vector<16x64xf32>
    %34 = arith.addf %32, %33 : vector<16x64xf32>
    %35 = arith.addf %20, %21 : vector<16x64xf32>
    %cst_15 = arith.constant 8.99999984E-4 : f32
    %36 = vector.broadcast %cst_15 : f32 to vector<16x64xf32>
    %37 = arith.addf %35, %36 : vector<16x64xf32>
    %38 = arith.mulf %34, %37 : vector<16x64xf32>
    %39 = tpu.reciprocal %38 {approx = true} : vector<16x64xf32> -> vector<16x64xf32>
    %40 = arith.mulf %38, %39 : vector<16x64xf32>
    %cst_16 = arith.constant 2.000000e+00 : f32
    %41 = vector.broadcast %cst_16 : f32 to vector<16x64xf32>
    %42 = arith.subf %41, %40 : vector<16x64xf32>
    %43 = arith.mulf %39, %42 : vector<16x64xf32>
    %44 = arith.mulf %31, %43 : vector<16x64xf32>
    %c4_i32 = arith.constant 4 : i32
    %45 = arith.muli %arg0, %c4_i32 : i32
    %c8_i32 = arith.constant 8 : i32
    %46 = arith.subi %c8_i32, %45 : i32
    %c4_i32_17 = arith.constant 4 : i32
    %47 = arith.minsi %c4_i32_17, %46 : i32
    %c16_i32 = arith.constant 16 : i32
    %48 = arith.muli %47, %c16_i32 : i32
    %49 = tpu.iota {dimensions = array<i32: 1>} : vector<16x64xi32>
    %50 = vector.broadcast %48 : i32 to vector<16x64xi32>
    %51 = arith.cmpi slt, %49, %50 : vector<16x64xi32>
    %cst_18 = arith.constant 0.000000e+00 : f32
    %52 = vector.broadcast %cst_18 : f32 to vector<16x64xf32>
    %53 = arith.select %51, %44, %52 : vector<16x64xi1>, vector<16x64xf32>
    %54 = vector.shape_cast %53 : vector<16x64xf32> to vector<1x16x64xf32>
    %cst_19 = arith.constant dense<0.000000e+00> : vector<1xf32>
    %55 = vector.multi_reduction <add>, %54, %cst_19 [1, 2] : vector<1x16x64xf32> to vector<1xf32>
    %56 = vector.shape_cast %55 : vector<1xf32> to vector<1x1x1xf32>
    %57 = vector.extract %56[0, 0, 0] : f32 from vector<1x1x1xf32>
    %58 = vector.broadcast %57 : f32 to vector<1x1x128xf32>
    %c0_20 = arith.constant 0 : index
    %c0_21 = arith.constant 0 : index
    %c0_22 = arith.constant 0 : index
    %59 = vector.load %arg5[%c0_20, %c0_21, %c0_22] : memref<1x1x128xf32, #tpu.memory_space<vmem>>, vector<1x1x128xf32>
    tpu.vector_store %arg5[%c0_20, %c0_21, %c0_22], %58 {strides = array<i32>} : memref<1x1x128xf32, #tpu.memory_space<vmem>>, vector<1x1x128xf32>,
    return
  }
  func.func @transform_0(%arg0: i32) -> (i32, i32, i32) {
    %c0_i32 = arith.constant 0 : i32
    %c0_i32_0 = arith.constant 0 : i32
    %c0_i32_1 = arith.constant 0 : i32
    return %arg0, %c0_i32, %c0_i32_0 : i32, i32, i32
  }
  func.func @transform_1(%arg0: i32) -> (i32, i32, i32) {
    %c0_i32 = arith.constant 0 : i32
    %c0_i32_0 = arith.constant 0 : i32
    %c0_i32_1 = arith.constant 0 : i32
    return %arg0, %c0_i32, %c0_i32_0 : i32, i32, i32
  }
  func.func @transform_2(%arg0: i32) -> (i32, i32) {
    %c0_i32 = arith.constant 0 : i32
    %c0_i32_0 = arith.constant 0 : i32
    %c0_i32_1 = arith.constant 0 : i32
    return %c0_i32, %c0_i32_0 : i32, i32
  }
  func.func @transform_3(%arg0: i32) -> (i32, i32) {
    %c0_i32 = arith.constant 0 : i32
    %c0_i32_0 = arith.constant 0 : i32
    %c0_i32_1 = arith.constant 0 : i32
    return %c0_i32, %c0_i32_0 : i32, i32
  }
  func.func @transform_4(%arg0: i32) -> (i32, i32, i32) {
    %c0_i32 = arith.constant 0 : i32
    %c0_i32_0 = arith.constant 0 : i32
    %c0_i32_1 = arith.constant 0 : i32
    return %arg0, %c0_i32, %c0_i32_0 : i32, i32, i32
  }
}

</mosaic_0001>

<bundles_post_ra>
// kernel: tpu_custom_call.1
= control target key start
LH: loop header
LB: loop body
LE: loop exit
PB: predicated region body
PF: predicated region fallthrough
CT: control target
= control target key end

     0   :  { %s1605_s0 = inlined_call_operand.hbm [shape: f32[2,16,64], index: 0, kind: input, shape index: {}]   ;;  %s1606_s1 = inlined_call_operand.hbm [shape: f32[2,16,64], index: 1, kind: input, shape index: {}]   ;;  %s1607_s2 = inlined_call_operand.hbm [shape: f32[80,80], index: 2, kind: input, shape index: {}]   ;;  %s1608_s3 = inlined_call_operand.hbm [shape: f32[64,64], index: 3, kind: input, shape index: {}]   ;;  %s1609_s4 = inlined_call_operand.hbm [shape: f32[2,1,128], index: 4, kind: output, shape index: {}]  }
   0x1   :  { %1617 = sst [smem:[#allocation16_spill]] %s1605_s0 }
   0x2   :  { %9 = vsyncpa [#allocation3], 0 }
   0x3   :  { %11 = vsyncpa [#allocation3 + $0x1], 0 }
   0x4   :  { %12 = vsyncpa [#allocation6], 0 }
   0x5   :  { %14 = vsyncpa [#allocation6 + $0x1], 0 }
   0x6   :  { %15 = vsyncpa [#allocation9], 0 }
   0x7   :  { %16 = vsyncpa [#allocation4], 0 }
   0x8   :  { %18 = vsyncpa [#allocation4 + $0x1], 0  ;;  %s1283_s15 = smov 0   ;;  %s1285_s16 = smov 0  }
   0x9   :  { %s1287_s17 = smov 0   ;;  %s1289_s18 = smov 0  }
   0xa LB: > { %s1304_s19 = sadd.s32 4294967295, %s1249_s18   ;;  %s792_s20 = sadd.s32 4294967294, %s1249_s18   ;;  %s1249_s18 = sphi %s1289_s18, %s1639_s18   ;;  %s1245_s17 = sphi %s1287_s17, %s1638_s17   ;;  %s1241_s16 = sphi %s1285_s16, %s1637_s16   ;;  %s1237_s15 = sphi %s1283_s15, %s1636_s15  }
   0xb   : > { %p44_p0 = scmp.ne.s32.totalorder %s1241_s16, %s1237_s15  ;;  %p1610_p1 = scmp.eq.s32.totalorder %s1304_s19, 0 }
   0xc   : > { %p142_p3 = scmp.eq.s32.totalorder %s792_s20, 1  ;;  %p793_p5 = scmp.ge.s32.totalorder %s1249_s18, 1 }
   0xd   : > { %p1313_p4 = por %p1610_p1, %p44_p0  ;;  %p149_p7 = scmp.lt.s32.totalorder %s1249_s18, 3 }
   0xe   : > { %p1318_p6 = por %p142_p3, %p44_p0  ;;  %s1251_s24 = smov [#allocation7]  }
   0xf   : > { %s1618_s21 = scalar_select %p1313_p4, 1, 0 }
  0x10   : > { %s1619_s22 = scalar_select %p1318_p6, 1, 0 }
  0x11   : > { %p1323_p8 = pnand %p793_p5, %p149_p7  ;;  %s161_s25 = sshll.u32 %s1251_s24, 4  ;;  %s1327_s25 = int_to_ptr.vmem [resolvable:$true] %s161_s25 }
  0x12   : > { %s1252_s27 = smov [#allocation8]   ;;  %s1055_s5 = scalar_lea.hbm %s1607_s2, 1280 }
  0x13   : > { %p991_p9 = pneg %p1323_p8  ;;  %s174_s28 = sshll.u32 %s1252_s27, 4  ;;  %s1338_s28 = int_to_ptr.vmem [resolvable:$true] %s174_s28 }
  0x14   : > { %p1056_p12 = scmp.ne.s32.totalorder %s1607_s2, %s1055_s5  ;;  %p1062_p5 = scmp.lt.u32.totalorder %s1055_s5, %s1607_s2 }
  0x15   : > { %p1334_p11 = pnand %p991_p9, %p1610_p1 }
  0x17   : > { %p1057_p13 = pneg %p1334_p11 }
  0x19   : > { %p1058_p0 = pnand %p1057_p13, %p1056_p12 }
  0x1b   : > { %p1059_p3 = pneg %p1058_p0 }
  0x1d   : > { %p1064_p7 = pnand %p1062_p5, %p1059_p3 }
  0x1f   : > { %1067 = shalt.err (!%p1064_p7)
}
  0x20   : > { %s1068_s10 = scalar_lea.vmem %s1327_s25, 1280  ;;  %p1076_p2 = scmp.lt.s32.totalorder %s1327_s25, %s1327_s25 }
  0x21   : > { %p1069_p9 = scmp.ne.s32.totalorder %s1327_s25, %s1068_s10  ;;  %p1077_p12 = scmp.lt.s32.totalorder %s1068_s10, %s1068_s10 }
  0x23   : > { %p1071_p10 = pnand %p1069_p9, %p1057_p13  ;;  %p1078_p0 = por %p1077_p12, %p1076_p2 }
  0x25   : > { %p1072_p1 = pneg %p1071_p10 }
  0x27   : > { %p1079_p6 = pnand %p1078_p0, %p1072_p1 }
  0x29   : > { %1082 = shalt.err (!%p1079_p6)
}
  0x2a   : > { %s1611_s11 = smov 128   ;;  %s1613_s12 = smov 8  }
  0x2b   : > { %994 = dma.hbm_to_vmem [thread:$0]  (!%p1334_p11), %s1607_s2, 1280, %s1327_s25, [#allocation6], %s1611_s11, %s1611_s11, %s1613_s12  }
  0x2c   : > { %s1083_s27 = scalar_lea.hbm %s1608_s3, 1024 }
  0x2d   : > { %p1084_p1 = scmp.ne.s32.totalorder %s1608_s3, %s1083_s27  ;;  %p1090_p10 = scmp.lt.u32.totalorder %s1083_s27, %s1608_s3 }
  0x2f   : > { %p1086_p2 = pnand %p1084_p1, %p1057_p13 }
  0x31   : > { %p1087_p6 = pneg %p1086_p2 }
  0x33   : > { %p1092_p3 = pnand %p1090_p10, %p1087_p6 }
  0x35   : > { %1095 = shalt.err (!%p1092_p3)
}
  0x36   : > { %s1096_s25 = scalar_lea.vmem %s1338_s28, 1024  ;;  %p1104_p12 = scmp.lt.s32.totalorder %s1338_s28, %s1338_s28 }
  0x37   : > { %p1097_p5 = scmp.ne.s32.totalorder %s1338_s28, %s1096_s25  ;;  %p1105_p0 = scmp.lt.s32.totalorder %s1096_s25, %s1096_s25 }
  0x39   : > { %p1099_p7 = pnand %p1097_p5, %p1057_p13  ;;  %p1106_p1 = por %p1105_p0, %p1104_p12 }
  0x3b   : > { %p1100_p9 = pneg %p1099_p7 }
  0x3d   : > { %p1107_p2 = pnand %p1106_p1, %p1100_p9 }
  0x3f   : > { %1110 = shalt.err (!%p1107_p2)
}
  0x40   : > { %997 = dma.hbm_to_vmem [thread:$0]  (!%p1334_p11), %s1608_s3, 1024, %s1338_s28, [#allocation9], %s1611_s11, %s1611_s11, %s1613_s12  }
  0x41   : > { %s1399_s26 = sadd.s32 1, %s1249_s18   ;;  %s31_s9 = sadd.s32 1, %s1245_s17 }
  0x42   : > { %s28_s10 = ssub.s32 %s1249_s18, %s1399_s26  ;;  %p38_p13 = scmp.ne.s32.totalorder %s1245_s17, %s1241_s16 }
  0x43   : > { %p29_p6 = scmp.eq.s32.totalorder %s28_s10, 0  ;;  %p39_p10 = scmp.eq.s32.totalorder %s1249_s18, 0 }
  0x44   : > { %p1622_p3 = scmp.eq.s32.totalorder %s1304_s19, 1  ;;  %p1011_p7 = scmp.lt.s32.totalorder %s1249_s18, 2 }
  0x45   : > { %s1415_s14 = scalar_select %p29_p6, %s1245_s17, %s31_s9  }
  0x46   : > { %p1409_p5 = por %p1622_p3, %p38_p13  ;;  %p40_p9 = por %p39_p10, %p38_p13 }
  0x47   : > { %s188_s20 = sand.u32 1, %s1245_s17   ;;  %s833_s28 = sshll.u32 %s1249_s18, 8 }
  0x48   : > { %s1623_s13 = scalar_select %p1409_p5, 1, 0 }
  0x49   : > { %s797_s24 = sshll.u32 %s188_s20, 4  ;;  %s1624_s0 = sld [smem:[#allocation16_spill]] }
  0x4a   : > { %s192_s5 = scalar_lea.vmem [#allocation2], %s797_s24  ;;  %p1426_p11 = pnand %p1011_p7, %p40_p9 }
  0x4b   : > { %s199_s6 = sshll.u32 %s192_s5, 4  ;;  %s1433_s9 = scalar_lea.hbm %s1606_s1, %s833_s28  ;;  %s1424_s6 = int_to_ptr.vmem [resolvable:$true] %s199_s6 }
  0x4c   : > { %s213_s10 = scalar_lea.vmem [#allocation5], %s797_s24  ;;  %s1437_s29 = scalar_lea.sflag [#allocation3], %s188_s20 }
  0x4d   : > { %s1435_s27 = sshll.u32 %s213_s10, 4  ;;  %p1113_p0 = pneg %p1426_p11  ;;  %s1469_s27 = int_to_ptr.vmem [resolvable:$true] %s1435_s27 }
  0x4f   : > { %s1422_s30 = scalar_lea.hbm %s1624_s0, %s833_s28  ;;  %s1116_s7 = scalar_lea.hbm %s1624_s0, 512 }
  0x50   : > { %s1111_s5 = scalar_lea.hbm %s1422_s30, 256  ;;  %p1117_p13 = scmp.lt.u32.totalorder %s1422_s30, %s1624_s0 }
  0x51   : > { %p1112_p12 = scmp.ne.s32.totalorder %s1422_s30, %s1111_s5  ;;  %p1118_p6 = scmp.lt.u32.totalorder %s1116_s7, %s1111_s5 }
  0x52   : > { %p1120_p3 = scmp.lt.u32.totalorder %s1111_s5, %s1422_s30 }
  0x53   : > { %p1114_p1 = pnand %p1113_p0, %p1112_p12  ;;  %p1119_p10 = por %p1118_p6, %p1117_p13 }
  0x55   : > { %p1115_p2 = pneg %p1114_p1  ;;  %p1121_p7 = por %p1120_p3, %p1119_p10 }
  0x57   : > { %p1122_p9 = pnand %p1121_p7, %p1115_p2 }
  0x59   : > { %1125 = shalt.err (!%p1122_p9)
}
  0x5a   : > { %s1126_s20 = scalar_lea.vmem %s1424_s6, 256  ;;  %s1255_s11 = smov [#allocation2]  }
  0x5b   : > { %p1127_p12 = scmp.ne.s32.totalorder %s1424_s6, %s1126_s20  ;;  %s1131_s12 = sshll.u32 %s1255_s11, 4  ;;  %s1132_s12 = int_to_ptr.vmem [resolvable:$false] %s1131_s12 }
  0x5c   : > { %s1133_s24 = scalar_lea.vmem %s1132_s12, 512  ;;  %p1134_p4 = scmp.lt.s32.totalorder %s1424_s6, %s1132_s12 }
  0x5d   : > { %p1129_p1 = pnand %p1127_p12, %p1113_p0  ;;  %p1135_p13 = scmp.lt.s32.totalorder %s1133_s24, %s1126_s20 }
  0x5f   : > { %p1130_p5 = pneg %p1129_p1  ;;  %p1136_p6 = por %p1135_p13, %p1134_p4 }
  0x61   : > { %p1137_p10 = pnand %p1136_p6, %p1130_p5 }
  0x63   : > { %1140 = shalt.err (!%p1137_p10)
}
  0x64   : > { %s1626_s10 = smov 8   ;;  %s1627_s5 = smov 128  }
  0x65   : > { %1001 = dma.hbm_to_vmem [thread:$0]  (!%p1426_p11), %s1422_s30, 256, %s1424_s6, %s1437_s29, %s1627_s5, %s1627_s5, %s1626_s10  }
  0x66   : > { %s209_s7 = sand.u32 1, %s1249_s18   ;;  %s1141_s28 = scalar_lea.hbm %s1433_s9, 256 }
  0x67   : > { %s1472_s8 = scalar_lea.sflag [#allocation6], %s209_s7  ;;  %p1142_p4 = scmp.ne.s32.totalorder %s1433_s9, %s1141_s28 }
  0x68   : > { %s1146_s12 = scalar_lea.hbm %s1606_s1, 512  ;;  %p1147_p3 = scmp.lt.u32.totalorder %s1433_s9, %s1606_s1 }
  0x69   : > { %p1144_p5 = pnand %p1142_p4, %p1113_p0  ;;  %p1148_p7 = scmp.lt.u32.totalorder %s1146_s12, %s1141_s28 }
  0x6a   : > { %p1150_p12 = scmp.lt.u32.totalorder %s1141_s28, %s1433_s9 }
  0x6b   : > { %p1145_p2 = pneg %p1144_p5  ;;  %p1149_p9 = por %p1148_p7, %p1147_p3 }
  0x6d   : > { %p1151_p1 = por %p1150_p12, %p1149_p9 }
  0x6f   : > { %p1152_p13 = pnand %p1151_p1, %p1145_p2 }
  0x71   : > { %1155 = shalt.err (!%p1152_p13)
}
  0x72   : > { %s1156_s30 = scalar_lea.vmem %s1469_s27, 256  ;;  %s1256_s6 = smov [#allocation5]  }
  0x73   : > { %p1157_p6 = scmp.ne.s32.totalorder %s1469_s27, %s1156_s30  ;;  %s1161_s29 = sshll.u32 %s1256_s6, 4  ;;  %s1162_s29 = int_to_ptr.vmem [resolvable:$false] %s1161_s29 }
  0x74   : > { %s1163_s0 = scalar_lea.vmem %s1162_s29, 512  ;;  %p1164_p5 = scmp.lt.s32.totalorder %s1469_s27, %s1162_s29 }
  0x75   : > { %p1159_p10 = pnand %p1157_p6, %p1113_p0  ;;  %p1165_p3 = scmp.lt.s32.totalorder %s1163_s0, %s1156_s30 }
  0x77   : > { %p1160_p4 = pneg %p1159_p10  ;;  %p1166_p7 = por %p1165_p3, %p1164_p5 }
  0x79   : > { %p1167_p9 = pnand %p1166_p7, %p1160_p4 }
  0x7b   : > { %1170 = shalt.err (!%p1167_p9)
}
  0x7c   : > { %1004 = dma.hbm_to_vmem [thread:$0]  (!%p1426_p11), %s1433_s9, 256, %s1469_s27, %s1472_s8, %s1627_s5, %s1627_s5, %s1626_s10  }
  0x7d   : > { %232 = sbr.rel (%p1323_p8) target bundleno = 871 (0x367), region = 36  ;;  %s1504_s7 = sand.u32 (!%p1323_p8), 1, %s1241_s16  }
  0x7e   : > { %s804_s28 = sshll.u32 (!%p1323_p8), %s1504_s7, 4  ;;  %s235_s20 = scalar_lea.sflag (!%p1323_p8), [#allocation3], %s1504_s7 }
  0x7f   : > { %s1508_s11 = scalar_lea.vmem (!%p1323_p8), [#allocation2], %s804_s28  ;;  %p1628_p0 = scmp.ne.s32.totalorder (!%p1323_p8), %s1618_s21, 0 }
  0x84   : > { %1216 = dma.done.wait (%p1628_p0), %s235_s20, 256  }
  0x85   : > { %1218 = vsyncadd (%p1628_p0), %s235_s20, 4294967040  ;;  %s243_s25 = sand.u32 1, %s1304_s19   ;;  %s1515_s9 = scalar_lea.vmem [#allocation5], %s804_s28 }
  0x86   : > { %s244_s23 = scalar_lea.sflag [#allocation6], %s243_s25 }
  0x87   : > { %1220 = dma.done.wait (%p1628_p0), %s244_s23, 256  }
  0x88   : > { %1222 = vsyncadd (%p1628_p0), %s244_s23, 4294967040  ;;  %p1629_p8 = scmp.eq.s32.totalorder %s1304_s19, 0 }
  0x8a   : > { %1224 = dma.done.wait (%p1629_p8), [#allocation6], 1280   ;;  %p1630_p11 = pmov %p1629_p8 }
  0x8b   : > { %p1631_p2 = pmov %p1629_p8 }
  0x8c   : > { %1226 = vsyncadd (%p1630_p11), [#allocation6], 4294966016 }
  0x8d   : > { %1228 = dma.done.wait (%p1631_p2), [#allocation9], 1024   ;;  %p1632_p12 = pmov %p1631_p2 }
  0x8e   : > { %v294_v0 = vld [vmem:[#allocation8] sm:$0xff]  ;;  %v295_v1 = vld [vmem:[#allocation8 + $0x8] sm:$0xff]  ;;  %v296_v2 = vld [vmem:[#allocation8 + $0x10] sm:$0xff]  ;;  %vm302_vm0 = vcmask 523264   ;;  %vm458_vm1 = vcmask 654336   ;;  %s828_s21 = sshll.u32 %s1304_s19, 2 }
  0x8f   : > { %1230 = vsyncadd (%p1632_p12), [#allocation9], 4294966272  ;;  %v939_v3 = vpack.c.bf16 %v295_v1, %v294_v0  ;;  %v297_v4 = vld [vmem:[#allocation8 + $0x18] sm:$0xff]  ;;  %v298_v6 = vld [vmem:[#allocation8 + $0x20] sm:$0xff]  ;;  %s647_s27 = ssub.s32 8, %s828_s21  ;;  %s283_s5 = scalar_lea.vmem [#allocation10], %s1504_s7 }
  0x90   : > { %v943_v5 = vpack.c.bf16 %v297_v4, %v296_v2  ;;  %v299_v7 = vld [vmem:[#allocation8 + $0x28] sm:$0xff]  ;;  %v284_v8 = vld [vmem:[%s1508_s11] sm:$0xff]  ;;  %v301_v11 = vld [vmem:[#allocation8 + $0x38] sm:$0xff]  ;;  %p648_p1 = scmp.lt.s32.totalorder %s647_s27, 4  ;;  %s684_s8 = sshll.u32 %s283_s5, 4  ;;  %s1558_s8 = int_to_ptr.vmem [resolvable:$true] %s684_s8 }
  0x91   : > { %940 = vmatprep.subr.bf16.mxu0 %v939_v3  ;;  %889 = vmatprep.mubr.msk.f32.mxu0 %vm302_vm0, %v284_v8  ;;  %v947_v9 = vpack.c.bf16 %v299_v7, %v298_v6  ;;  %v300_v10 = vld [vmem:[#allocation8 + $0x30] sm:$0xff]  ;;  %v285_v13 = vld [vmem:[%s1508_s11 + $0x8] sm:$0xff]  ;;  %v288_v15 = vmul.f32 %v284_v8, %v284_v8  ;;  %v450_v39 = vld [vmem:[#allocation7 + $0x10] sm:$0xff]  ;;  %s830_s12 = sshll.u32 %s1304_s19, 4  ;;  %s672_s0 = scalar_lea.sflag [#allocation4], %s1504_s7 }
  0x92   : > { %942 = vmatpush3.bf16.msra.mxu0 %v939_v3  ;;  %v951_v12 = vpack.c.bf16 %v301_v11, %v300_v10  ;;  %v286_v14 = vld [vmem:[%s1515_s9] sm:$0xff]  ;;  %v287_v16 = vld [vmem:[%s1515_s9 + $0x8] sm:$0xff]  ;;  %v289_v17 = vmul.f32 %v285_v13, %v285_v13  ;;  %s1641_s27 = smov (!%p648_p1, %s647_s27), 4  ;;  %s1563_s29 = scalar_lea.hbm %s1609_s4, %s830_s12 }
  0x93   : > { %944 = vmatprep.subr.bf16.mxu0 %v943_v5  ;;  %v290_v18 = vmul.f32 %v286_v14, %v286_v14  ;;  %v291_v19 = vmul.f32 %v287_v16, %v287_v16  ;;  %v292_v20 = vmul.f32 %v286_v14, %v284_v8  ;;  %v293_v21 = vmul.f32 %v287_v16, %v285_v13  ;;  %v448_v22 = vld [vmem:[#allocation7] sm:$0xff]  ;;  %v449_v38 = vld [vmem:[#allocation7 + $0x8] sm:$0xff]  ;;  %v451_v40 = vld [vmem:[#allocation7 + $0x18] sm:$0xff]  ;;  %s829_s10 = sshll.u32 %s1641_s27, 4  ;;  %s1171_s28 = scalar_lea.vmem %s1558_s8, 16 }
  0x94   : > { %924 = vmatprep.mubr.msk.f32.mxu1 %vm458_vm1, %v448_v22  ;;  %v452_v41 = vld [vmem:[#allocation7 + $0x20] sm:$0xff]  ;;  %v453_v42 = vld [vmem:[#allocation7 + $0x28] sm:$0xff]  ;;  %v454_v43 = vld [vmem:[#allocation7 + $0x30] sm:$0xff]  ;;  %p1172_p13 = scmp.ne.s32.totalorder %s1558_s8, %s1171_s28  ;;  %p1633_p6 = scmp.ne.s32.totalorder %s1623_s13, 0 }
  0x95   : > { %v455_v44 = vld [vmem:[#allocation7 + $0x38] sm:$0xff]  ;;  %v456_v45 = vld [vmem:[#allocation7 + $0x40] sm:$0xff]  ;;  %v457_v46 = vld [vmem:[#allocation7 + $0x48] sm:$0xff]  ;;  %s1257_s19 = smov [#allocation10]  }
  0x96   : > { %946 = vmatpush3.bf16.msra.mxu0 %v943_v5  ;;  %p1173_p10 = pnand %p1172_p13, %p1633_p6  ;;  %s1175_s20 = sshll.u32 %s1257_s19, 4  ;;  %s1176_s20 = int_to_ptr.vmem [resolvable:$false] %s1175_s20 }
  0x97   : > { %948 = vmatprep.subr.bf16.mxu0 %v947_v9  ;;  %s1177_s11 = scalar_lea.vmem %s1176_s20, 32  ;;  %p1178_p5 = scmp.lt.s32.totalorder %s1558_s8, %s1176_s20 }
  0x98   : > { %p1174_p4 = pneg %p1173_p10  ;;  %p1179_p3 = scmp.lt.s32.totalorder %s1177_s11, %s1171_s28 }
  0x9a   : > { %950 = vmatpush3.bf16.msra.mxu0 %v947_v9  ;;  %p1180_p7 = por %p1179_p3, %p1178_p5 }
  0x9b   : > { %952 = vmatprep.subr.bf16.mxu0 %v951_v12 }
  0x9c   : > { %p1181_p9 = pnand %p1180_p7, %p1174_p4 }
  0x9e   : > { %954 = vmatpush3.bf16.msra.mxu0 %v951_v12 }
  0xa1   : > { %890 = vmatmul.mubr.msk.f32.vlgmr.msra.gmra.mrb[0].mxu0 %vm302_vm0, %v285_v13 }
  0xa2   : > { %892 = vmatprep.mubr.msk.f32.mxu0 %vm302_vm0, %v286_v14 }
  0xa5   : > { %893 = vmatmul.mubr.msk.f32.gmra.mrb[2].mxu0 %vm302_vm0, %v287_v16 }
  0xa6   : > { %895 = vmatprep.mubr.msk.f32.mxu0 %vm302_vm0, %v288_v15 }
  0xa9   : > { %896 = vmatmul.mubr.msk.f32.gmra.mrb[4].mxu0 %vm302_vm0, %v289_v17 }
  0xaa   : > { %898 = vmatprep.mubr.msk.f32.mxu0 %vm302_vm0, %v290_v18 }
  0xad   : > { %899 = vmatmul.mubr.msk.f32.gmra.mrb[6].mxu0 %vm302_vm0, %v291_v19 }
  0xae   : > { %901 = vmatprep.mubr.msk.f32.mxu0 %vm302_vm0, %v292_v20 }
  0xb1   : > { %902 = vmatmul.mubr.msk.f32.gmra.mrb[8].mxu0 %vm302_vm0, %v293_v21 }
 0x174   : > { %v891_v23 = vpop.f32.mrb[0].mxu0 }
 0x175   : > { %v399_v24 = vpop.f32.mrb[1].mxu0 }
 0x176   : > { %v955_v25 = vpack.c.bf16 %v891_v23, %v399_v24 }
 0x178   : > { %v894_v26 = vpop.f32.mrb[2].mxu0  ;;  %956 = vmatprep.subr.bf16.mxu1 %v955_v25 }
 0x179   : > { %v409_v27 = vpop.f32.mrb[3].mxu0  ;;  %958 = vmatpush3.bf16.msra.mxu1 %v955_v25  ;;  %v651_v25 = vlaneseq }
 0x17a   : > { %v959_v28 = vpack.c.bf16 %v894_v26, %v409_v27 }
 0x17c   : > { %v897_v29 = vpop.f32.mrb[4].mxu0  ;;  %960 = vmatprep.subr.bf16.mxu1 %v959_v28 }
 0x17d   : > { %v419_v30 = vpop.f32.mrb[5].mxu0  ;;  %962 = vmatpush3.bf16.msra.mxu1 %v959_v28 }
 0x17e   : > { %v963_v31 = vpack.c.bf16 %v897_v29, %v419_v30  ;;  %v652_v30 = vand.u32 127, %v651_v25 }
 0x180   : > { %v900_v32 = vpop.f32.mrb[6].mxu0  ;;  %964 = vmatprep.subr.bf16.mxu1 %v963_v31 }
 0x181   : > { %v429_v33 = vpop.f32.mrb[7].mxu0  ;;  %966 = vmatpush3.bf16.msra.mxu1 %v963_v31 }
 0x182   : > { %v967_v34 = vpack.c.bf16 %v900_v32, %v429_v33  ;;  %v653_v32 = vstv %s829_s10 }
 0x183   : > { %vm654_vm2 = vcmp.lt.s32.totalorder %v652_v30, %v653_v32 }
 0x184   : > { %v903_v35 = vpop.f32.mrb[8].mxu0  ;;  %968 = vmatprep.subr.bf16.mxu1 %v967_v34 }
 0x185   : > { %v439_v36 = vpop.f32.mrb[9].mxu0  ;;  %970 = vmatpush3.bf16.msra.mxu1 %v967_v34 }
 0x186   : > { %v971_v37 = vpack.c.bf16 %v903_v35, %v439_v36 }
 0x188   : > { %972 = vmatprep.subr.bf16.mxu1 %v971_v37 }
 0x189   : > { %974 = vmatpush3.bf16.msra.mxu1 %v971_v37 }
 0x18c   : > { %925 = vmatmul.mubr.msk.f32.vlgmr.msra.gmra.mrb[0].mxu1 %vm458_vm1, %v449_v38 }
 0x18d   : > { %927 = vmatprep.mubr.msk.f32.mxu1 %vm458_vm1, %v450_v39 }
 0x190   : > { %928 = vmatmul.mubr.msk.f32.gmra.mrb[2].mxu1 %vm458_vm1, %v451_v40 }
 0x191   : > { %930 = vmatprep.mubr.msk.f32.mxu1 %vm458_vm1, %v452_v41 }
 0x194   : > { %931 = vmatmul.mubr.msk.f32.gmra.mrb[4].mxu1 %vm458_vm1, %v453_v42 }
 0x195   : > { %933 = vmatprep.mubr.msk.f32.mxu1 %vm458_vm1, %v454_v43 }
 0x198   : > { %934 = vmatmul.mubr.msk.f32.gmra.mrb[6].mxu1 %vm458_vm1, %v455_v44 }
 0x199   : > { %936 = vmatprep.mubr.msk.f32.mxu1 %vm458_vm1, %v456_v45 }
 0x19c   : > { %937 = vmatmul.mubr.msk.f32.gmra.mrb[8].mxu1 %vm458_vm1, %v457_v46 }
 0x25f   : > { %v926_v47 = vpop.f32.mrb[0].mxu1 }
 0x260   : > { %v555_v48 = vpop.f32.mrb[1].mxu1  ;;  %v605_v50 = vmul.f32 %v926_v47, %v926_v47 }
 0x261   : > { %v604_v54 = vmul.f32 %v555_v48, %v555_v48 }
 0x263   : > { %v929_v49 = vpop.f32.mrb[2].mxu1 }
 0x264   : > { %v607_v51 = vmul.f32 %v929_v49, %v929_v49  ;;  %v609_v52 = vmul.f32 %v929_v49, %v926_v47  ;;  %v565_v53 = vpop.f32.mrb[3].mxu1 }
 0x265   : > { %v606_v55 = vmul.f32 %v565_v53, %v565_v53  ;;  %v608_v56 = vmul.f32 %v565_v53, %v555_v48 }
 0x266   : > { %v627_v57 = vadd.f32 %v607_v51, %v605_v50  ;;  %v617_v6 = vmul.f32 2.0, %v609_v52 }
 0x267   : > { %v626_v58 = vadd.f32 %v606_v55, %v604_v54  ;;  %v932_v59 = vpop.f32.mrb[4].mxu1  ;;  %v616_v11 = vmul.f32 2.0, %v608_v56 }
 0x268   : > { %v611_v60 = vsub.f32 %v932_v59, %v605_v50  ;;  %v575_v61 = vpop.f32.mrb[5].mxu1  ;;  %v629_v7 = vadd.f32 0.0001, %v627_v57  ;;  %v619_v19 = vadd.f32 0.0001, %v617_v6 }
 0x269   : > { %v610_v62 = vsub.f32 %v575_v61, %v604_v54  ;;  %v628_v12 = vadd.f32 0.0001, %v626_v58  ;;  %v618_v21 = vadd.f32 0.0001, %v616_v11 }
 0x26b   : > { %v935_v63 = vpop.f32.mrb[6].mxu1 }
 0x26c   : > { %v613_v0 = vsub.f32 %v935_v63, %v607_v51  ;;  %v585_v1 = vpop.f32.mrb[7].mxu1 }
 0x26d   : > { %v612_v2 = vsub.f32 %v585_v1, %v606_v55 }
 0x26e   : > { %v631_v3 = vadd.f32 %v613_v0, %v611_v60 }
 0x26f   : > { %v630_v4 = vadd.f32 %v612_v2, %v610_v62  ;;  %v938_v5 = vpop.f32.mrb[8].mxu1 }
 0x270   : > { %v633_v8 = vadd.f32 0.0009, %v631_v3  ;;  %v615_v9 = vsub.f32 %v938_v5, %v609_v52  ;;  %v595_v10 = vpop.f32.mrb[9].mxu1 }
 0x271   : > { %v632_v13 = vadd.f32 0.0009, %v630_v4  ;;  %v614_v14 = vsub.f32 %v595_v10, %v608_v56 }
 0x272   : > { %v635_v15 = vmul.f32 %v633_v8, %v629_v7  ;;  %v621_v16 = vmul.f32 2.0, %v615_v9 }
 0x273   : > { %v634_v17 = vmul.f32 %v632_v13, %v628_v12  ;;  %v620_v18 = vmul.f32 2.0, %v614_v14 }
 0x274   : > { %1051 = vrcp.f32 %v635_v15  ;;  %v623_v20 = vadd.f32 0.0009, %v621_v16 }
 0x275   : > { %1053 = vrcp.f32 %v634_v17  ;;  %v622_v22 = vadd.f32 0.0009, %v620_v18 }
 0x276   : > { %v625_v23 = vmul.f32 %v623_v20, %v619_v19 }
 0x277   : > { %v624_v24 = vmul.f32 %v622_v22, %v618_v21 }
 0x27e   : > { %v1052_v26 = vpop.eup %1051 }
 0x27f   : > { %v1054_v27 = vpop.eup %1053  ;;  %v639_v28 = vmul.f32 %v1052_v26, %v635_v15 }
 0x280   : > { %v638_v29 = vmul.f32 %v1054_v27, %v634_v17 }
 0x281   : > { %v641_v31 = vsub.f32 2.0, %v639_v28 }
 0x282   : > { %v640_v33 = vsub.f32 2.0, %v638_v29 }
 0x283   : > { %v643_v34 = vmul.f32 %v1052_v26, %v641_v31 }
 0x284   : > { %v642_v35 = vmul.f32 %v1054_v27, %v640_v33 }
 0x285   : > { %v645_v36 = vmul.f32 %v643_v34, %v625_v23 }
 0x286   : > { %v644_v37 = vmul.f32 %v642_v35, %v624_v24 }
 0x287   : > { %v656_v38 = vsel %vm654_vm2, %v645_v36, 0.0 }
 0x288   : > { %v655_v39 = vsel %vm654_vm2, %v644_v37, 0.0  ;;  %v658_v40 = vsel %vm302_vm0, %v656_v38, 0.0 }
 0x289   : > { %v657_v41 = vsel %vm302_vm0, %v655_v39, 0.0 }
 0x28a   : > { %v659_v42 = vadd.f32 %v658_v40, %v657_v41 }
 0x28c   : > { %660 = vadd.xlane.f32.xlu0 %v659_v42 }
 0x319   : > { %v661_v43 = vpop.xlane.xlu0 %660 }
 0x31a   : > { %v662_v44 = vrot.slane %v661_v43, 4 }
 0x31c   : > { %v663_v45 = vadd.f32 %v662_v44, %v661_v43 }
 0x31e   : > { %v664_v46 = vrot.slane %v663_v45, 2 }
 0x320   : > { %v665_v47 = vadd.f32 %v664_v46, %v663_v45 }
 0x322   : > { %v666_v48 = vrot.slane %v665_v47, 1 }
 0x324   : > { %v667_v49 = vadd.f32 %v666_v48, %v665_v47 }
 0x326   : > { %975 = vpush %v667_v49 }
 0x357   : > { %s976_s24 = spop %975 }
 0x358   : > { %v669_v50 = vstv %s976_s24 }
 0x359   : > { %670 = vst [vmem:[%s283_s5] sm:$0x1] %v669_v50 }
 0x35a   : > { %1184 = shalt.err (!%p1181_p9)
}
 0x35b   : > { %s1185_s7 = scalar_lea.hbm %s1563_s29, 16  ;;  %s1189_s9 = scalar_lea.hbm %s1609_s4, 32 }
 0x35c   : > { %p1186_p0 = scmp.ne.s32.totalorder %s1563_s29, %s1185_s7  ;;  %p1190_p2 = scmp.lt.u32.totalorder %s1563_s29, %s1609_s4 }
 0x35d   : > { %p1191_p12 = scmp.lt.u32.totalorder %s1189_s9, %s1185_s7  ;;  %p1193_p13 = scmp.lt.u32.totalorder %s1185_s7, %s1563_s29 }
 0x35e   : > { %p1187_p8 = pnand %p1186_p0, %p1633_p6 }
 0x35f   : > { %p1192_p1 = por %p1191_p12, %p1190_p2 }
 0x360   : > { %p1188_p11 = pneg %p1187_p8 }
 0x361   : > { %p1194_p10 = por %p1193_p13, %p1192_p1 }
 0x363   : > { %p1195_p4 = pnand %p1194_p10, %p1188_p11 }
 0x365   : > { %1198 = shalt.err (!%p1195_p4)
}
 0x366   : > { %989 = dma.vmem_to_hbm [thread:$0]  (%p1633_p6), %s1558_s8, 16, %s1563_s29, %s672_s0  }
 0x367 PF: > { %s696_s10 = sand.u32 1, %s1237_s15   ;;  %p1634_p5 = scmp.ne.s32.totalorder %s1619_s22, 0 }
 0x368   : > { %p1635_p3 = scmp.ge.s32.totalorder %s1249_s18, 2  ;;  %s697_s5 = scalar_lea.sflag [#allocation4], %s696_s10 }
 0x36a   : > { %p1006_p7 = pnand %p1635_p3, %p1634_p5 }
 0x36c   : > { %1232 = dma.done.wait (!%p1006_p7), %s697_s5, 16  }
 0x36d   : > { %1234 = vsyncadd (!%p1006_p7), %s697_s5, 4294967280  ;;  %p21_p9 = scmp.ge.s32.totalorder %s1399_s26, 4   ;;  %s1636_s15 = smov %s1241_s16 }
 0x36e   : > { %s1637_s16 = smov %s1245_s17  ;;  %s1638_s17 = smov %s1415_s14 }
 0x36f   : > { %s1639_s18 = smov %s1399_s26  ;;  %23 = sbr.rel (!%p21_p9) target bundleno = 10 (0xa), region = 102 }
 0x376   :  { %701 = vsyncpa [#allocation3], 1 }
 0x377   :  { %703 = vsyncpa [#allocation3 + $0x1], 1 }
 0x378   :  { %704 = vsyncpa [#allocation6], 1 }
 0x379   :  { %706 = vsyncpa [#allocation6 + $0x1], 1 }
 0x37a   :  { %707 = vsyncpa [#allocation9], 1 }
 0x37b   :  { %708 = vsyncpa [#allocation4], 1 }
 0x37c   :  { %710 = vsyncpa [#allocation4 + $0x1], 1 }

</bundles_post_ra>
